<compile_context>
chip_gen: v6e
topology: v6e:2x2x1
jax: 0.10.0
libtpu: 0.0.40
codegen_flags: <defaults>
</compile_context>

<pallas_src>
import jax
import jax.numpy as jnp
from jax.experimental import pallas as pl
from jax.experimental.pallas import tpu as pltpu

LANE = 128
_VMEM_BUDGET = 48 << 20  # conservative per-TensorCore budget (fits v7x's 64 MiB/TC)


def _round_up(n, m):
    return ((n + m - 1) // m) * m


def mlp_scale_kernel(scale_ref, x_ref, w1_ref, b1_ref, w2_ref, b2_ref, o_ref, acc_ref):
    """One (batch-tile i, hidden-tile k) grid step."""
    k = pl.program_id(1)

    @pl.when(k == 0)
    def _():
        acc_ref[...] = jnp.zeros_like(acc_ref)

    # First linear + ReLU on this hidden tile (MXU matmul, f32 accumulation).
    # x is cast to the weight dtype in-kernel so the wrapper never copies x.
    x = x_ref[...].astype(w1_ref.dtype)
    h = jnp.dot(x, w1_ref[...], preferred_element_type=jnp.float32)
    h = jnp.maximum(h + b1_ref[...], 0.0)

    # Second linear: accumulate this hidden tile's contribution in f32.
    acc_ref[...] += jnp.dot(h.astype(w2_ref.dtype), w2_ref[...],
                            preferred_element_type=jnp.float32)

    # Finalize: output bias + ReLU + learned scalar scale, lane-dense store.
    @pl.when(k == pl.num_programs(1) - 1)
    def _():
        y = jnp.maximum(acc_ref[...] + b2_ref[...], 0.0)
        o_ref[...] = (y * scale_ref[0]).astype(o_ref.dtype)


def prepare_params(w1, b1, w2, b2, *, use_bf16=True, tk_max=512):
    """Pad/cast the (constant) weights ONCE, outside the per-call path.

    Zero-padding is semantics-preserving: padded hidden units give
    relu(0 + 0) = 0 and their w2 rows are zero; padded output columns are
    sliced off by the caller.
    """
    D_in, H = w1.shape
    D_out = w2.shape[1]
    wdtype = jnp.bfloat16 if use_bf16 else jnp.float32

    # Hidden tile size (multiple of 128); pad H up to a whole number of tiles.
    tk = tk_max if H > tk_max else _round_up(H, LANE)
    tk = _round_up(tk, LANE)
    H_p = _round_up(H, tk)
    D_out_p = _round_up(D_out, LANE)

    w1_p = jnp.zeros((D_in, H_p), wdtype).at[:, :H].set(w1.astype(wdtype))
    b1_p = jnp.zeros((1, H_p), jnp.float32).at[0, :H].set(b1.astype(jnp.float32))
    w2_p = jnp.zeros((H_p, D_out_p), wdtype).at[:H, :D_out].set(w2.astype(wdtype))
    b2_p = jnp.zeros((1, D_out_p), jnp.float32).at[0, :D_out].set(b2.astype(jnp.float32))

    return dict(w1=w1_p, b1=b1_p, w2=w2_p, b2=b2_p,
                D_in=D_in, H=H, D_out=D_out,
                tk=tk, H_p=H_p, D_out_p=D_out_p,
                use_bf16=use_bf16)


def _estimate_vmem_bytes(block_b, D_in, tk, D_out_p, num_k, x_isz, w_isz, o_isz):
    nbuf_w = 1 if num_k == 1 else 2           # resident weights single-buffered
    weights = nbuf_w * (D_in * tk + tk * D_out_p) * w_isz
    biases = nbuf_w * 8 * tk * 4 + 8 * D_out_p * 4
    x_tile = 2 * block_b * D_in * x_isz       # double-buffered input tile
    out_tile = 2 * block_b * D_out_p * o_isz  # double-buffered output tile
    acc = block_b * D_out_p * 4               # f32 accumulator scratch
    hidden = block_b * tk * (4 + w_isz)       # in-kernel hidden temp (+ cast copy)
    return weights + biases + x_tile + out_tile + acc + hidden


def _pick_block_b(B, D_in, tk, D_out_p, num_k, x_isz, w_isz, o_isz,
                  budget=_VMEM_BUDGET):
    if B <= 8:
        return B  # tiny batch: one full-extent block (MXU underfilled regardless)
    nbuf_w = 1 if num_k == 1 else 2
    fixed = (nbuf_w * (D_in * tk + tk * D_out_p) * w_isz
             + nbuf_w * 8 * tk * 4 + 8 * D_out_p * 4)
    per_row = (2 * D_in * x_isz + 2 * D_out_p * o_isz + D_out_p * 4
               + tk * (4 + w_isz))
    cap = (max(budget - fixed, per_row * 8) // per_row) // 8 * 8
    cap = int(max(8, min(cap, 1024)))
    # >= 2 grid steps along the "parallel" batch axis so v7x's 2nd core has work.
    blk = min(cap, _round_up(pl.cdiv(B, 2), 8))
    return max(8, blk)


def model_forward(x, params, scale, *, block_b=None):
    """x: [B, D_in] (any float dtype), params: from prepare_params, scale: scalar."""
    B, D_in = x.shape
    assert D_in == params["D_in"], "input feature dim mismatch"
    tk, H_p, D_out_p, D_out = params["tk"], params["H_p"], params["D_out_p"], params["D_out"]
    num_k = H_p // tk
    out_dtype = jnp.bfloat16 if params["use_bf16"] else jnp.float32

    x_isz = jnp.dtype(x.dtype).itemsize
    w_isz = jnp.dtype(params["w1"].dtype).itemsize
    o_isz = jnp.dtype(out_dtype).itemsize

    if block_b is None:
        block_b = _pick_block_b(B, D_in, tk, D_out_p, num_k, x_isz, w_isz, o_isz)
    num_b = pl.cdiv(B, block_b)

    est = _estimate_vmem_bytes(block_b, D_in, tk, D_out_p, num_k, x_isz, w_isz, o_isz)
    vmem_limit = int(min(max(est * 1.25 + (2 << 20), 32 << 20), 60 << 20))

    scale_1d = jnp.asarray(scale, jnp.float32).reshape(1)
    resident = num_k == 1  # whole hidden dim in one tile -> weights stay VMEM-resident

    def _call(use_pipeline_mode):
        def spec(shape, imap, nbuf):
            if use_pipeline_mode and nbuf is not None:
                return pl.BlockSpec(shape, imap, pipeline_mode=pl.Buffered(nbuf))
            return pl.BlockSpec(shape, imap)

        # Resident weights (constant index maps) single-buffered; streamed
        # weights (hidden-tiled) keep the default double buffering.
        w_nbuf = 1 if resident else None

        return pl.pallas_call(
            mlp_scale_kernel,
            out_shape=jax.ShapeDtypeStruct((B, D_out_p), out_dtype),
            grid=(num_b, num_k),
            in_specs=[
                pl.BlockSpec(memory_space=pltpu.MemorySpace.SMEM),    # scale (scalar)
                pl.BlockSpec((block_b, D_in), lambda i, k: (i, 0)),   # x (batch-pipelined)
                spec((D_in, tk), lambda i, k: (0, k), w_nbuf),        # w1
                spec((1, tk), lambda i, k: (0, k), w_nbuf),           # b1
                spec((tk, D_out_p), lambda i, k: (k, 0), w_nbuf),     # w2
                spec((1, D_out_p), lambda i, k: (0, 0), 1),           # b2 (constant)
            ],
            out_specs=pl.BlockSpec((block_b, D_out_p), lambda i, k: (i, 0)),
            scratch_shapes=[pltpu.VMEM((block_b, D_out_p), jnp.float32)],
            compiler_params=pltpu.CompilerParams(
                dimension_semantics=("parallel", "arbitrary"),
                vmem_limit_bytes=vmem_limit,
            ),
        )(scale_1d, x, params["w1"], params["b1"], params["w2"], params["b2"])

    try:
        out_p = _call(True)
    except Exception:
        # Fallback for JAX versions without BlockSpec(pipeline_mode=...).
        out_p = _call(False)

    # Strip output-feature padding (no-op copy when D_out is already 128-aligned).
    return out_p if D_out == D_out_p else out_p[:, :D_out]


if __name__ == "__main__":
    # Small shapes implied by the module: [B, D_in] -> hidden H -> D_out.
    B, D_in, H, D_out = 8, 16, 32, 8
    init_value = 10.0

    key = jax.random.PRNGKey(0)
    kx, kw1, kb1, kw2, kb2 = jax.random.split(key, 5)
    x = jax.random.normal(kx, (B, D_in), jnp.float32)
    # Deterministic parameter init (stand-in for PyTorch's default Linear init).
    w1 = jax.random.normal(kw1, (D_in, H), jnp.float32) * 0.1
    b1 = jax.random.normal(kb1, (H,), jnp.float32) * 0.1
    w2 = jax.random.normal(kw2, (H, D_out), jnp.float32) * 0.1
    b2 = jax.random.normal(kb2, (D_out,), jnp.float32) * 0.1
    scale = jnp.float32(init_value)

    # Plain-JAX reference.
    ref = jnp.maximum(jnp.maximum(x @ w1 + b1, 0.0) @ w2 + b2, 0.0) * scale

    # Strict f32 parity path (debug / accuracy-critical callers).
    params_f32 = prepare_params(w1, b1, w2, b2, use_bf16=False)
    out_f32 = jax.block_until_ready(model_forward(x, params_f32, scale))
    assert out_f32.shape == (B, D_out)
    assert jnp.allclose(out_f32, ref, atol=1e-5, rtol=1e-5)

    # Default bf16-operand path (f32 MXU accumulation): ~3x MXU throughput and
    # half the weight/activation HBM+VMEM on v5e/v6e/v7x; bf16 output writeback.
    params_bf16 = prepare_params(w1, b1, w2, b2)  # use_bf16=True by default
    out_bf16 = jax.block_until_ready(model_forward(x, params_bf16, scale))
    assert out_bf16.shape == (B, D_out)
    assert jnp.allclose(out_bf16.astype(jnp.float32), ref, atol=5e-1, rtol=5e-2)

    print("KERNEL_OK")
</pallas_src>

<mosaic_0001>
module attributes {stable_mosaic.version = 11 : i64} {
  func.func @mlp_scale_kernel(%arg0: i32, %arg1: i32, %arg2: memref<1xf32, #tpu.memory_space<smem>>, %arg3: memref<8x16xf32, #tpu.memory_space<vmem>>, %arg4: memref<16x128xf32, #tpu.memory_space<vmem>>, %arg5: memref<1x128xf32, #tpu.memory_space<vmem>>, %arg6: memref<128x128xf32, #tpu.memory_space<vmem>>, %arg7: memref<1x128xf32, #tpu.memory_space<vmem>>, %arg8: memref<8x128xf32, #tpu.memory_space<vmem>>, %arg9: memref<8x128xf32, #tpu.memory_space<vmem>>) attributes {dimension_semantics = [#tpu.dimension_semantics<parallel>, #tpu.dimension_semantics<arbitrary>], iteration_bounds = array<i64: 1, 1>, scalar_prefetch = 0 : i64, scratch_operands = 1 : i64, tpu.core_type = #tpu.core_type<tc>, window_params = [{transform_indices = @transform_0, window_bounds = array<i64: 1>}, {transform_indices = @transform_1, window_bounds = array<i64: 8, 16>}, {pipeline_mode = #tpu.pipeline_mode<synchronous>, transform_indices = @transform_2, window_bounds = array<i64: 16, 128>}, {pipeline_mode = #tpu.pipeline_mode<synchronous>, transform_indices = @transform_3, window_bounds = array<i64: 1, 128>}, {pipeline_mode = #tpu.pipeline_mode<synchronous>, transform_indices = @transform_4, window_bounds = array<i64: 128, 128>}, {pipeline_mode = #tpu.pipeline_mode<synchronous>, transform_indices = @transform_5, window_bounds = array<i64: 1, 128>}, {transform_indices = @transform_6, window_bounds = array<i64: 8, 128>}]} {
    %c0_i32 = arith.constant 0 : i32
    %0 = arith.cmpi eq, %arg1, %c0_i32 : i32
    %1 = arith.extui %0 : i1 to i32
    %c0_i32_0 = arith.constant 0 : i32
    %2 = arith.cmpi ne, %1, %c0_i32_0 : i32
    scf.if %2 {
      %cst_16 = arith.constant 0.000000e+00 : f32
      %19 = vector.broadcast %cst_16 : f32 to vector<8x128xf32>
      %c0_17 = arith.constant 0 : index
      %c0_18 = arith.constant 0 : index
      %20 = vector.load %arg9[%c0_17, %c0_18] : memref<8x128xf32, #tpu.memory_space<vmem>>, vector<8x128xf32>
      tpu.vector_store %arg9[%c0_17, %c0_18], %19 {strides = array<i32>} : memref<8x128xf32, #tpu.memory_space<vmem>>, vector<8x128xf32>,
    } else {
    }
    %c0 = arith.constant 0 : index
    %c0_1 = arith.constant 0 : index
    %3 = vector.load %arg3[%c0, %c0_1] : memref<8x16xf32, #tpu.memory_space<vmem>>, vector<8x16xf32>
    %c0_2 = arith.constant 0 : index
    %c0_3 = arith.constant 0 : index
    %4 = vector.load %arg4[%c0_2, %c0_3] : memref<16x128xf32, #tpu.memory_space<vmem>>, vector<16x128xf32>
    %cst = arith.constant dense<0.000000e+00> : vector<8x128xf32>
    %5 = tpu.matmul %3, %4, %cst {dimension_numbers = #tpu.dot_dimension_numbers<[1], [0], [0], [1], [0, 0, 1, 1], [], []>} : vector<8x16xf32>, vector<16x128xf32>, vector<8x128xf32> -> vector<8x128xf32>
    %c0_4 = arith.constant 0 : index
    %c0_5 = arith.constant 0 : index
    %6 = vector.load %arg5[%c0_4, %c0_5] : memref<1x128xf32, #tpu.memory_space<vmem>>, vector<1x128xf32>
    %7 = vector.broadcast %6 : vector<1x128xf32> to vector<8x128xf32>
    %8 = arith.addf %5, %7 : vector<8x128xf32>
    %cst_6 = arith.constant 0.000000e+00 : f32
    %9 = vector.broadcast %cst_6 : f32 to vector<8x128xf32>
    %10 = arith.maximumf %8, %9 : vector<8x128xf32>
    %c0_7 = arith.constant 0 : index
    %c0_8 = arith.constant 0 : index
    %11 = vector.load %arg9[%c0_7, %c0_8] : memref<8x128xf32, #tpu.memory_space<vmem>>, vector<8x128xf32>
    %c0_9 = arith.constant 0 : index
    %c0_10 = arith.constant 0 : index
    %12 = vector.load %arg6[%c0_9, %c0_10] : memref<128x128xf32, #tpu.memory_space<vmem>>, vector<128x128xf32>
    %cst_11 = arith.constant dense<0.000000e+00> : vector<8x128xf32>
    %13 = tpu.matmul %10, %12, %cst_11 {dimension_numbers = #tpu.dot_dimension_numbers<[1], [0], [0], [1], [0, 0, 1, 1], [], []>} : vector<8x128xf32>, vector<128x128xf32>, vector<8x128xf32> -> vector<8x128xf32>
    %14 = arith.addf %11, %13 : vector<8x128xf32>
    %c0_12 = arith.constant 0 : index
    %c0_13 = arith.constant 0 : index
    %15 = vector.load %arg9[%c0_12, %c0_13] : memref<8x128xf32, #tpu.memory_space<vmem>>, vector<8x128xf32>
    tpu.vector_store %arg9[%c0_12, %c0_13], %14 {strides = array<i32>} : memref<8x128xf32, #tpu.memory_space<vmem>>, vector<8x128xf32>,
    %c0_i32_14 = arith.constant 0 : i32
    %16 = arith.cmpi eq, %arg1, %c0_i32_14 : i32
    %17 = arith.extui %16 : i1 to i32
    %c0_i32_15 = arith.constant 0 : i32
    %18 = arith.cmpi ne, %17, %c0_i32_15 : i32
    scf.if %18 {
      %c0_16 = arith.constant 0 : index
      %c0_17 = arith.constant 0 : index
      %19 = vector.load %arg9[%c0_16, %c0_17] : memref<8x128xf32, #tpu.memory_space<vmem>>, vector<8x128xf32>
      %c0_18 = arith.constant 0 : index
      %c0_19 = arith.constant 0 : index
      %20 = vector.load %arg7[%c0_18, %c0_19] : memref<1x128xf32, #tpu.memory_space<vmem>>, vector<1x128xf32>
      %21 = vector.broadcast %20 : vector<1x128xf32> to vector<8x128xf32>
      %22 = arith.addf %19, %21 : vector<8x128xf32>
      %cst_20 = arith.constant 0.000000e+00 : f32
      %23 = vector.broadcast %cst_20 : f32 to vector<8x128xf32>
      %24 = arith.maximumf %22, %23 : vector<8x128xf32>
      %c0_21 = arith.constant 0 : index
      %25 = memref.load %arg2[%c0_21] : memref<1xf32, #tpu.memory_space<smem>>
      %26 = vector.broadcast %25 : f32 to vector<8x128xf32>
      %27 = arith.mulf %24, %26 : vector<8x128xf32>
      %c0_22 = arith.constant 0 : index
      %c0_23 = arith.constant 0 : index
      %28 = vector.load %arg8[%c0_22, %c0_23] : memref<8x128xf32, #tpu.memory_space<vmem>>, vector<8x128xf32>
      tpu.vector_store %arg8[%c0_22, %c0_23], %27 {strides = array<i32>} : memref<8x128xf32, #tpu.memory_space<vmem>>, vector<8x128xf32>,
    } else {
    }
    return
  }
  func.func @transform_0(%arg0: i32, %arg1: i32) -> i32 {
    %c0_i32 = arith.constant 0 : i32
    %c0_i32_0 = arith.constant 0 : i32
    return %c0_i32 : i32
  }
  func.func @transform_1(%arg0: i32, %arg1: i32) -> (i32, i32) {
    %c0_i32 = arith.constant 0 : i32
    %c0_i32_0 = arith.constant 0 : i32
    return %arg0, %c0_i32 : i32, i32
  }
  func.func @transform_2(%arg0: i32, %arg1: i32) -> (i32, i32) {
    %c0_i32 = arith.constant 0 : i32
    %c0_i32_0 = arith.constant 0 : i32
    return %c0_i32, %arg1 : i32, i32
  }
  func.func @transform_3(%arg0: i32, %arg1: i32) -> (i32, i32) {
    %c0_i32 = arith.constant 0 : i32
    %c0_i32_0 = arith.constant 0 : i32
    return %c0_i32, %arg1 : i32, i32
  }
  func.func @transform_4(%arg0: i32, %arg1: i32) -> (i32, i32) {
    %c0_i32 = arith.constant 0 : i32
    %c0_i32_0 = arith.constant 0 : i32
    return %arg1, %c0_i32 : i32, i32
  }
  func.func @transform_5(%arg0: i32, %arg1: i32) -> (i32, i32) {
    %c0_i32 = arith.constant 0 : i32
    %c0_i32_0 = arith.constant 0 : i32
    %c0_i32_1 = arith.constant 0 : i32
    return %c0_i32, %c0_i32_0 : i32, i32
  }
  func.func @transform_6(%arg0: i32, %arg1: i32) -> (i32, i32) {
    %c0_i32 = arith.constant 0 : i32
    %c0_i32_0 = arith.constant 0 : i32
    return %arg0, %c0_i32 : i32, i32
  }
}

module attributes {stable_mosaic.version = 11 : i64} {
  func.func @mlp_scale_kernel(%arg0: i32, %arg1: i32, %arg2: memref<1xf32, #tpu.memory_space<smem>>, %arg3: memref<8x16xf32, #tpu.memory_space<vmem>>, %arg4: memref<16x128xf32, #tpu.memory_space<vmem>>, %arg5: memref<1x128xf32, #tpu.memory_space<vmem>>, %arg6: memref<128x128xf32, #tpu.memory_space<vmem>>, %arg7: memref<1x128xf32, #tpu.memory_space<vmem>>, %arg8: memref<8x128xf32, #tpu.memory_space<vmem>>, %arg9: memref<8x128xf32, #tpu.memory_space<vmem>>) attributes {dimension_semantics = [#tpu.dimension_semantics<parallel>, #tpu.dimension_semantics<arbitrary>], iteration_bounds = array<i64: 1, 1>, scalar_prefetch = 0 : i64, scratch_operands = 1 : i64, tpu.core_type = #tpu.core_type<tc>, window_params = [{transform_indices = @transform_0, window_bounds = array<i64: 1>}, {transform_indices = @transform_1, window_bounds = array<i64: 8, 16>}, {transform_indices = @transform_2, window_bounds = array<i64: 16, 128>}, {transform_indices = @transform_3, window_bounds = array<i64: 1, 128>}, {transform_indices = @transform_4, window_bounds = array<i64: 128, 128>}, {pipeline_mode = #tpu.pipeline_mode<synchronous>, transform_indices = @transform_5, window_bounds = array<i64: 1, 128>}, {transform_indices = @transform_6, window_bounds = array<i64: 8, 128>}]} {
    %c0_i32 = arith.constant 0 : i32
    %0 = arith.cmpi eq, %arg1, %c0_i32 : i32
    %1 = arith.extui %0 : i1 to i32
    %c0_i32_0 = arith.constant 0 : i32
    %2 = arith.cmpi ne, %1, %c0_i32_0 : i32
    scf.if %2 {
      %cst_16 = arith.constant 0.000000e+00 : f32
      %19 = vector.broadcast %cst_16 : f32 to vector<8x128xf32>
      %c0_17 = arith.constant 0 : index
      %c0_18 = arith.constant 0 : index
      %20 = vector.load %arg9[%c0_17, %c0_18] : memref<8x128xf32, #tpu.memory_space<vmem>>, vector<8x128xf32>
      tpu.vector_store %arg9[%c0_17, %c0_18], %19 {strides = array<i32>} : memref<8x128xf32, #tpu.memory_space<vmem>>, vector<8x128xf32>,
    } else {
    }
    %c0 = arith.constant 0 : index
    %c0_1 = arith.constant 0 : index
    %3 = vector.load %arg3[%c0, %c0_1] : memref<8x16xf32, #tpu.memory_space<vmem>>, vector<8x16xf32>
    %c0_2 = arith.constant 0 : index
    %c0_3 = arith.constant 0 : index
    %4 = vector.load %arg4[%c0_2, %c0_3] : memref<16x128xf32, #tpu.memory_space<vmem>>, vector<16x128xf32>
    %cst = arith.constant dense<0.000000e+00> : vector<8x128xf32>
    %5 = tpu.matmul %3, %4, %cst {dimension_numbers = #tpu.dot_dimension_numbers<[1], [0], [0], [1], [0, 0, 1, 1], [], []>} : vector<8x16xf32>, vector<16x128xf32>, vector<8x128xf32> -> vector<8x128xf32>
    %c0_4 = arith.constant 0 : index
    %c0_5 = arith.constant 0 : index
    %6 = vector.load %arg5[%c0_4, %c0_5] : memref<1x128xf32, #tpu.memory_space<vmem>>, vector<1x128xf32>
    %7 = vector.broadcast %6 : vector<1x128xf32> to vector<8x128xf32>
    %8 = arith.addf %5, %7 : vector<8x128xf32>
    %cst_6 = arith.constant 0.000000e+00 : f32
    %9 = vector.broadcast %cst_6 : f32 to vector<8x128xf32>
    %10 = arith.maximumf %8, %9 : vector<8x128xf32>
    %c0_7 = arith.constant 0 : index
    %c0_8 = arith.constant 0 : index
    %11 = vector.load %arg9[%c0_7, %c0_8] : memref<8x128xf32, #tpu.memory_space<vmem>>, vector<8x128xf32>
    %c0_9 = arith.constant 0 : index
    %c0_10 = arith.constant 0 : index
    %12 = vector.load %arg6[%c0_9, %c0_10] : memref<128x128xf32, #tpu.memory_space<vmem>>, vector<128x128xf32>
    %cst_11 = arith.constant dense<0.000000e+00> : vector<8x128xf32>
    %13 = tpu.matmul %10, %12, %cst_11 {dimension_numbers = #tpu.dot_dimension_numbers<[1], [0], [0], [1], [0, 0, 1, 1], [], []>} : vector<8x128xf32>, vector<128x128xf32>, vector<8x128xf32> -> vector<8x128xf32>
    %14 = arith.addf %11, %13 : vector<8x128xf32>
    %c0_12 = arith.constant 0 : index
    %c0_13 = arith.constant 0 : index
    %15 = vector.load %arg9[%c0_12, %c0_13] : memref<8x128xf32, #tpu.memory_space<vmem>>, vector<8x128xf32>
    tpu.vector_store %arg9[%c0_12, %c0_13], %14 {strides = array<i32>} : memref<8x128xf32, #tpu.memory_space<vmem>>, vector<8x128xf32>,
    %c0_i32_14 = arith.constant 0 : i32
    %16 = arith.cmpi eq, %arg1, %c0_i32_14 : i32
    %17 = arith.extui %16 : i1 to i32
    %c0_i32_15 = arith.constant 0 : i32
    %18 = arith.cmpi ne, %17, %c0_i32_15 : i32
    scf.if %18 {
      %c0_16 = arith.constant 0 : index
      %c0_17 = arith.constant 0 : index
      %19 = vector.load %arg9[%c0_16, %c0_17] : memref<8x128xf32, #tpu.memory_space<vmem>>, vector<8x128xf32>
      %c0_18 = arith.constant 0 : index
      %c0_19 = arith.constant 0 : index
      %20 = vector.load %arg7[%c0_18, %c0_19] : memref<1x128xf32, #tpu.memory_space<vmem>>, vector<1x128xf32>
      %21 = vector.broadcast %20 : vector<1x128xf32> to vector<8x128xf32>
      %22 = arith.addf %19, %21 : vector<8x128xf32>
      %cst_20 = arith.constant 0.000000e+00 : f32
      %23 = vector.broadcast %cst_20 : f32 to vector<8x128xf32>
      %24 = arith.maximumf %22, %23 : vector<8x128xf32>
      %c0_21 = arith.constant 0 : index
      %25 = memref.load %arg2[%c0_21] : memref<1xf32, #tpu.memory_space<smem>>
      %26 = vector.broadcast %25 : f32 to vector<8x128xf32>
      %27 = arith.mulf %24, %26 : vector<8x128xf32>
      %c0_22 = arith.constant 0 : index
      %c0_23 = arith.constant 0 : index
      %28 = vector.load %arg8[%c0_22, %c0_23] : memref<8x128xf32, #tpu.memory_space<vmem>>, vector<8x128xf32>
      tpu.vector_store %arg8[%c0_22, %c0_23], %27 {strides = array<i32>} : memref<8x128xf32, #tpu.memory_space<vmem>>, vector<8x128xf32>,
    } else {
    }
    return
  }
  func.func @transform_0(%arg0: i32, %arg1: i32) -> i32 {
    %c0_i32 = arith.constant 0 : i32
    %c0_i32_0 = arith.constant 0 : i32
    return %c0_i32 : i32
  }
  func.func @transform_1(%arg0: i32, %arg1: i32) -> (i32, i32) {
    %c0_i32 = arith.constant 0 : i32
    %c0_i32_0 = arith.constant 0 : i32
    return %arg0, %c0_i32 : i32, i32
  }
  func.func @transform_2(%arg0: i32, %arg1: i32) -> (i32, i32) {
    %c0_i32 = arith.constant 0 : i32
    %c0_i32_0 = arith.constant 0 : i32
    return %c0_i32, %arg1 : i32, i32
  }
  func.func @transform_3(%arg0: i32, %arg1: i32) -> (i32, i32) {
    %c0_i32 = arith.constant 0 : i32
    %c0_i32_0 = arith.constant 0 : i32
    return %c0_i32, %arg1 : i32, i32
  }
  func.func @transform_4(%arg0: i32, %arg1: i32) -> (i32, i32) {
    %c0_i32 = arith.constant 0 : i32
    %c0_i32_0 = arith.constant 0 : i32
    return %arg1, %c0_i32 : i32, i32
  }
  func.func @transform_5(%arg0: i32, %arg1: i32) -> (i32, i32) {
    %c0_i32 = arith.constant 0 : i32
    %c0_i32_0 = arith.constant 0 : i32
    %c0_i32_1 = arith.constant 0 : i32
    return %c0_i32, %c0_i32_0 : i32, i32
  }
  func.func @transform_6(%arg0: i32, %arg1: i32) -> (i32, i32) {
    %c0_i32 = arith.constant 0 : i32
    %c0_i32_0 = arith.constant 0 : i32
    return %arg0, %c0_i32 : i32, i32
  }
}

</mosaic_0001>

<bundles_post_ra>
// kernel: tpu_custom_call.1
= control target key start
LH: loop header
LB: loop body
LE: loop exit
PB: predicated region body
PF: predicated region fallthrough
CT: control target
= control target key end

     0   :  { %12 = vsyncpa [#allocation5], 0  ;;  %s499_s0 = inlined_call_operand.<no memory space> [shape: f32[1], index: 0, kind: input, shape index: {}]   ;;  %s500_s1 = inlined_call_operand.hbm [shape: f32[8,16], index: 1, kind: input, shape index: {}]   ;;  %s501_s2 = inlined_call_operand.hbm [shape: f32[16,128], index: 2, kind: input, shape index: {}]   ;;  %s502_s3 = inlined_call_operand.vmem [shape: f32[1,128], index: 3, kind: input, shape index: {}]   ;;  %s503_s4 = inlined_call_operand.hbm [shape: f32[128,128], index: 4, kind: input, shape index: {}]   ;;  %s504_s5 = inlined_call_operand.vmem [shape: f32[1,128], index: 5, kind: input, shape index: {}]   ;;  %s505_s6 = inlined_call_operand.hbm [shape: f32[8,128], index: 6, kind: output, shape index: {}]  }
   0x1   :  { %13 = vsyncpa [#allocation8], 0 }
   0x2   :  { %14 = vsyncpa [#allocation6], 0  ;;  %s435_s21 = smov [#allocation7]  }
   0x3   :  { %s32_s22 = sshll.u32 %s435_s21, 4  ;;  %s33_s22 = int_to_ptr.vmem [resolvable:$true] %s32_s22 }
   0x4   :  { %s357_s23 = scalar_lea.vmem %s33_s22, 256  ;;  %p362_p1 = scmp.lt.s32.totalorder %s33_s22, %s33_s22 }
   0x5   :  { %p358_p0 = scmp.ne.s32.totalorder %s33_s22, %s357_s23  ;;  %p363_p2 = scmp.lt.s32.totalorder %s357_s23, %s357_s23 }
   0x7   :  { %p364_p3 = por %p363_p2, %p362_p1 }
   0x9   :  { %p365_p4 = pnand %p364_p3, %p358_p0 }
   0xb   :  { %368 = shalt.err (!%p365_p4)
}
   0xc   :  { %s436_s24 = smov 128   ;;  %s437_s25 = smov 8  }
   0xd   :  { %38 = dma.hbm_to_vmem [thread:$0]  %s501_s2, 256, %s33_s22, [#allocation8], %s436_s24, %s436_s24, %s437_s25  }
   0xe   :  { %s438_s28 = smov [#allocation4]   ;;  %s439_s30 = smov [#allocation9]  }
   0xf   :  { %s23_s29 = sshll.u32 %s438_s28, 4  ;;  %s46_s7 = sshll.u32 %s439_s30, 4  ;;  %s24_s29 = int_to_ptr.vmem [resolvable:$true] %s23_s29  ;;  %s47_s7 = int_to_ptr.vmem [resolvable:$true] %s46_s7 }
  0x10   :  { %s377_s8 = scalar_lea.vmem %s24_s29, 128  ;;  %p382_p6 = scmp.lt.s32.totalorder %s24_s29, %s24_s29 }
  0x11   :  { %p378_p5 = scmp.ne.s32.totalorder %s24_s29, %s377_s8  ;;  %p383_p7 = scmp.lt.s32.totalorder %s377_s8, %s377_s8 }
  0x13   :  { %p384_p8 = por %p383_p7, %p382_p6 }
  0x15   :  { %p385_p9 = pnand %p384_p8, %p378_p5 }
  0x17   :  { %388 = shalt.err (!%p385_p9)
}
  0x18   :  { %26 = dma.hbm_to_vmem [thread:$0]  %s500_s1, 128, %s24_s29, [#allocation5]  }
  0x19   :  { %s397_s11 = scalar_lea.vmem %s47_s7, 2048  ;;  %p402_p11 = scmp.lt.s32.totalorder %s47_s7, %s47_s7 }
  0x1a   :  { %p398_p10 = scmp.ne.s32.totalorder %s47_s7, %s397_s11  ;;  %p403_p12 = scmp.lt.s32.totalorder %s397_s11, %s397_s11 }
  0x1c   :  { %p404_p13 = por %p403_p12, %p402_p11 }
  0x1e   :  { %p405_p0 = pnand %p404_p13, %p398_p10 }
  0x20   :  { %408 = shalt.err (!%p405_p0)
}
  0x21   :  { %52 = dma.hbm_to_vmem [thread:$0]  %s503_s4, 2048, %s47_s7, [#allocation8], %s436_s24, %s436_s24, %s437_s25  }
  0x22   :  { %429 = dma.done.wait [#allocation5], 128  }
  0x23   :  { %430 = vsyncadd [#allocation5], 4294967168 }
  0x24   :  { %431 = dma.done.wait [#allocation8], 2304  }
  0x25   :  { %432 = vsyncadd [#allocation8], 4294964992  ;;  %v440_v0 = vmov 0.0   ;;  %vm441_vm0 = vmmov 0   ;;  %v71_v1 = vld [vmem:[#allocation7 + $0x8] sm:$0xff]  ;;  %v70_v2 = vld [vmem:[#allocation7] sm:$0xff]  ;;  %v257_v28 = vstv %s499_s0 }
  0x26   :  { %299 = vmatprep.subr.mxu0 %v440_v0  ;;  %303 = vmatprep.mubr.msk.f32.mxu0 %vm441_vm0, %v440_v0  ;;  %v69_v3 = vld [vmem:[#allocation4] sm:$0xff]  ;;  %vm79_vm1 = vcmask 130048   ;;  %v170_v4 = vld [vmem:[#allocation9 + $0x78] sm:$0xff]  ;;  %v169_v5 = vld [vmem:[#allocation9 + $0x70] sm:$0xff]  ;;  %s442_s17 = smov [#allocation10]  }
  0x27   :  { %306 = vmatprep.subr.mxu1 %v440_v0  ;;  %338 = vmatprep.mubr.msk.f32.mxu1 %vm441_vm0, %v440_v0  ;;  %v168_v6 = vld [vmem:[#allocation9 + $0x68] sm:$0xff]  ;;  %v167_v7 = vld [vmem:[#allocation9 + $0x60] sm:$0xff]  ;;  %v166_v8 = vld [vmem:[#allocation9 + $0x58] sm:$0xff]  ;;  %s266_s18 = sshll.u32 %s442_s17, 4  ;;  %s267_s18 = int_to_ptr.vmem [resolvable:$true] %s266_s18 }
  0x28   :  { %300 = vmatpush3.msra.mxu0 %v71_v1  ;;  %307 = vmatpush3.msra.mxu1 %v170_v4  ;;  %v165_v9 = vld [vmem:[#allocation9 + $0x50] sm:$0xff]  ;;  %v164_v10 = vld [vmem:[#allocation9 + $0x48] sm:$0xff]  ;;  %v163_v11 = vld [vmem:[#allocation9 + $0x40] sm:$0xff]  ;;  %p414_p2 = scmp.lt.s32.totalorder %s267_s18, %s267_s18 }
  0x29   :  { %301 = vmatprep.subr.mxu0 %v440_v0  ;;  %308 = vmatprep.subr.mxu1 %v440_v0  ;;  %v162_v12 = vld [vmem:[#allocation9 + $0x38] sm:$0xff]  ;;  %v161_v13 = vld [vmem:[#allocation9 + $0x30] sm:$0xff]  ;;  %v160_v14 = vld [vmem:[#allocation9 + $0x28] sm:$0xff] }
  0x2a   :  { %302 = vmatpush3.msra.mxu0 %v70_v2  ;;  %309 = vmatpush3.msra.mxu1 %v169_v5  ;;  %v159_v15 = vld [vmem:[#allocation9 + $0x20] sm:$0xff]  ;;  %v158_v16 = vld [vmem:[#allocation9 + $0x18] sm:$0xff]  ;;  %v157_v17 = vld [vmem:[#allocation9 + $0x10] sm:$0xff] }
  0x2b   :  { %304 = vmatmul.mubr.msk.f32.vlgmr.msra.gmra.mxu0 %vm79_vm1, %v69_v3  ;;  %310 = vmatprep.subr.mxu1 %v440_v0  ;;  %v156_v18 = vld [vmem:[#allocation9 + $0x8] sm:$0xff]  ;;  %v155_v19 = vld [vmem:[#allocation9] sm:$0xff] }
  0x2c   :  { %311 = vmatpush3.msra.mxu1 %v168_v6  ;;  %v276_v20 = vld [vmem:[%s502_s3] ss:$0 sm:$0xff]  ;;  %s409_s3 = scalar_lea.vmem %s267_s18, 128 }
  0x2d   :  { %312 = vmatprep.subr.mxu1 %v440_v0  ;;  %v278_v25 = vld [vmem:[%s504_s5] ss:$0 sm:$0xff]  ;;  %p410_p1 = scmp.ne.s32.totalorder %s267_s18, %s409_s3  ;;  %p415_p3 = scmp.lt.s32.totalorder %s409_s3, %s409_s3 }
  0x2e   :  { %313 = vmatpush3.msra.mxu1 %v167_v7 }
  0x2f   :  { %314 = vmatprep.subr.mxu1 %v440_v0  ;;  %p416_p4 = por %p415_p3, %p414_p2 }
  0x30   :  { %315 = vmatpush3.msra.mxu1 %v166_v8 }
  0x31   :  { %316 = vmatprep.subr.mxu1 %v440_v0  ;;  %p417_p5 = pnand %p416_p4, %p410_p1 }
  0x32   :  { %317 = vmatpush3.msra.mxu1 %v165_v9 }
  0x33   :  { %318 = vmatprep.subr.mxu1 %v440_v0 }
  0x34   :  { %319 = vmatpush3.msra.mxu1 %v164_v10 }
  0x35   :  { %320 = vmatprep.subr.mxu1 %v440_v0 }
  0x36   :  { %321 = vmatpush3.msra.mxu1 %v163_v11 }
  0x37   :  { %322 = vmatprep.subr.mxu1 %v440_v0 }
  0x38   :  { %323 = vmatpush3.msra.mxu1 %v162_v12 }
  0x39   :  { %324 = vmatprep.subr.mxu1 %v440_v0 }
  0x3a   :  { %325 = vmatpush3.msra.mxu1 %v161_v13 }
  0x3b   :  { %326 = vmatprep.subr.mxu1 %v440_v0 }
  0x3c   :  { %327 = vmatpush3.msra.mxu1 %v160_v14 }
  0x3d   :  { %328 = vmatprep.subr.mxu1 %v440_v0 }
  0x3e   :  { %329 = vmatpush3.msra.mxu1 %v159_v15 }
  0x3f   :  { %330 = vmatprep.subr.mxu1 %v440_v0 }
  0x40   :  { %331 = vmatpush3.msra.mxu1 %v158_v16 }
  0x41   :  { %332 = vmatprep.subr.mxu1 %v440_v0 }
  0x42   :  { %333 = vmatpush3.msra.mxu1 %v157_v17 }
  0x43   :  { %334 = vmatprep.subr.mxu1 %v440_v0 }
  0x44   :  { %335 = vmatpush3.msra.mxu1 %v156_v18 }
  0x45   :  { %336 = vmatprep.subr.mxu1 %v440_v0 }
  0x46   :  { %337 = vmatpush3.msra.mxu1 %v155_v19 }
  0xeb   :  { %v149_v21 = vpop.f32.mrf.mxu0 }
  0xec   :  { %v150_v22 = vadd.f32 %v276_v20, %v149_v21 }
  0xed   :  { %v305_v23 = vpop.f32.mrf.mxu0 }
  0xee   :  { %v153_v24 = vmax.f32 %v150_v22, 0.0 }
  0xf0   :  { %339 = vmatmul.mubr.f32.vlgmr.msra.gmra.mxu1 %v153_v24 }
 0x1b0   :  { %v237_v26 = vpop.f32.mrf.mxu1 }
 0x1b1   :  { %v254_v27 = vadd.f32 %v278_v25, %v237_v26 }
 0x1b2   :  { %v340_v29 = vpop.f32.mrf.mxu1 }
 0x1b3   :  { %v255_v30 = vmax.f32 %v254_v27, 0.0 }
 0x1b5   :  { %v258_v31 = vmul.f32 %v257_v28, %v255_v30 }
 0x1b7   :  { %259 = vst [vmem:[#allocation10] sm:$0xff] %v258_v31 }
 0x1b8   :  { %420 = shalt.err (!%p417_p5)
}
 0x1b9   :  { %269 = dma.vmem_to_hbm [thread:$0]  %s267_s18, 128, %s505_s6, [#allocation6]  }
 0x1ba   :  { %433 = dma.done.wait [#allocation6], 128  }
 0x1bb   :  { %434 = vsyncadd [#allocation6], 4294967168 }
 0x1bc   :  { %273 = vsyncpa [#allocation5], 1 }
 0x1bd   :  { %274 = vsyncpa [#allocation8], 1 }
 0x1be   :  { %275 = vsyncpa [#allocation6], 1 }

// kernel: tpu_custom_call.1
= control target key start
LH: loop header
LB: loop body
LE: loop exit
PB: predicated region body
PF: predicated region fallthrough
CT: control target
= control target key end

     0   :  { %12 = vsyncpa [#allocation5], 0  ;;  %s499_s0 = inlined_call_operand.<no memory space> [shape: f32[1], index: 0, kind: input, shape index: {}]   ;;  %s500_s1 = inlined_call_operand.hbm [shape: f32[8,16], index: 1, kind: input, shape index: {}]   ;;  %s501_s2 = inlined_call_operand.hbm [shape: f32[16,128], index: 2, kind: input, shape index: {}]   ;;  %s502_s3 = inlined_call_operand.vmem [shape: f32[1,128], index: 3, kind: input, shape index: {}]   ;;  %s503_s4 = inlined_call_operand.hbm [shape: f32[128,128], index: 4, kind: input, shape index: {}]   ;;  %s504_s5 = inlined_call_operand.vmem [shape: f32[1,128], index: 5, kind: input, shape index: {}]   ;;  %s505_s6 = inlined_call_operand.hbm [shape: f32[8,128], index: 6, kind: output, shape index: {}]  }
   0x1   :  { %13 = vsyncpa [#allocation8], 0 }
   0x2   :  { %14 = vsyncpa [#allocation6], 0  ;;  %s435_s21 = smov [#allocation7]  }
   0x3   :  { %s32_s22 = sshll.u32 %s435_s21, 4  ;;  %s33_s22 = int_to_ptr.vmem [resolvable:$true] %s32_s22 }
   0x4   :  { %s357_s23 = scalar_lea.vmem %s33_s22, 256  ;;  %p362_p1 = scmp.lt.s32.totalorder %s33_s22, %s33_s22 }
   0x5   :  { %p358_p0 = scmp.ne.s32.totalorder %s33_s22, %s357_s23  ;;  %p363_p2 = scmp.lt.s32.totalorder %s357_s23, %s357_s23 }
   0x7   :  { %p364_p3 = por %p363_p2, %p362_p1 }
   0x9   :  { %p365_p4 = pnand %p364_p3, %p358_p0 }
   0xb   :  { %368 = shalt.err (!%p365_p4)
}
   0xc   :  { %s436_s24 = smov 128   ;;  %s437_s25 = smov 8  }
   0xd   :  { %38 = dma.hbm_to_vmem [thread:$0]  %s501_s2, 256, %s33_s22, [#allocation8], %s436_s24, %s436_s24, %s437_s25  }
   0xe   :  { %s438_s28 = smov [#allocation4]   ;;  %s439_s30 = smov [#allocation9]  }
   0xf   :  { %s23_s29 = sshll.u32 %s438_s28, 4  ;;  %s46_s7 = sshll.u32 %s439_s30, 4  ;;  %s24_s29 = int_to_ptr.vmem [resolvable:$true] %s23_s29  ;;  %s47_s7 = int_to_ptr.vmem [resolvable:$true] %s46_s7 }
  0x10   :  { %s377_s8 = scalar_lea.vmem %s24_s29, 128  ;;  %p382_p6 = scmp.lt.s32.totalorder %s24_s29, %s24_s29 }
  0x11   :  { %p378_p5 = scmp.ne.s32.totalorder %s24_s29, %s377_s8  ;;  %p383_p7 = scmp.lt.s32.totalorder %s377_s8, %s377_s8 }
  0x13   :  { %p384_p8 = por %p383_p7, %p382_p6 }
  0x15   :  { %p385_p9 = pnand %p384_p8, %p378_p5 }
  0x17   :  { %388 = shalt.err (!%p385_p9)
}
  0x18   :  { %26 = dma.hbm_to_vmem [thread:$0]  %s500_s1, 128, %s24_s29, [#allocation5]  }
  0x19   :  { %s397_s11 = scalar_lea.vmem %s47_s7, 2048  ;;  %p402_p11 = scmp.lt.s32.totalorder %s47_s7, %s47_s7 }
  0x1a   :  { %p398_p10 = scmp.ne.s32.totalorder %s47_s7, %s397_s11  ;;  %p403_p12 = scmp.lt.s32.totalorder %s397_s11, %s397_s11 }
  0x1c   :  { %p404_p13 = por %p403_p12, %p402_p11 }
  0x1e   :  { %p405_p0 = pnand %p404_p13, %p398_p10 }
  0x20   :  { %408 = shalt.err (!%p405_p0)
}
  0x21   :  { %52 = dma.hbm_to_vmem [thread:$0]  %s503_s4, 2048, %s47_s7, [#allocation8], %s436_s24, %s436_s24, %s437_s25  }
  0x22   :  { %429 = dma.done.wait [#allocation5], 128  }
  0x23   :  { %430 = vsyncadd [#allocation5], 4294967168 }
  0x24   :  { %431 = dma.done.wait [#allocation8], 2304  }
  0x25   :  { %432 = vsyncadd [#allocation8], 4294964992  ;;  %v440_v0 = vmov 0.0   ;;  %vm441_vm0 = vmmov 0   ;;  %v71_v1 = vld [vmem:[#allocation7 + $0x8] sm:$0xff]  ;;  %v70_v2 = vld [vmem:[#allocation7] sm:$0xff]  ;;  %v257_v28 = vstv %s499_s0 }
  0x26   :  { %299 = vmatprep.subr.mxu0 %v440_v0  ;;  %303 = vmatprep.mubr.msk.f32.mxu0 %vm441_vm0, %v440_v0  ;;  %v69_v3 = vld [vmem:[#allocation4] sm:$0xff]  ;;  %vm79_vm1 = vcmask 130048   ;;  %v170_v4 = vld [vmem:[#allocation9 + $0x78] sm:$0xff]  ;;  %v169_v5 = vld [vmem:[#allocation9 + $0x70] sm:$0xff]  ;;  %s442_s17 = smov [#allocation10]  }
  0x27   :  { %306 = vmatprep.subr.mxu1 %v440_v0  ;;  %338 = vmatprep.mubr.msk.f32.mxu1 %vm441_vm0, %v440_v0  ;;  %v168_v6 = vld [vmem:[#allocation9 + $0x68] sm:$0xff]  ;;  %v167_v7 = vld [vmem:[#allocation9 + $0x60] sm:$0xff]  ;;  %v166_v8 = vld [vmem:[#allocation9 + $0x58] sm:$0xff]  ;;  %s266_s18 = sshll.u32 %s442_s17, 4  ;;  %s267_s18 = int_to_ptr.vmem [resolvable:$true] %s266_s18 }
  0x28   :  { %300 = vmatpush3.msra.mxu0 %v71_v1  ;;  %307 = vmatpush3.msra.mxu1 %v170_v4  ;;  %v165_v9 = vld [vmem:[#allocation9 + $0x50] sm:$0xff]  ;;  %v164_v10 = vld [vmem:[#allocation9 + $0x48] sm:$0xff]  ;;  %v163_v11 = vld [vmem:[#allocation9 + $0x40] sm:$0xff]  ;;  %p414_p2 = scmp.lt.s32.totalorder %s267_s18, %s267_s18 }
  0x29   :  { %301 = vmatprep.subr.mxu0 %v440_v0  ;;  %308 = vmatprep.subr.mxu1 %v440_v0  ;;  %v162_v12 = vld [vmem:[#allocation9 + $0x38] sm:$0xff]  ;;  %v161_v13 = vld [vmem:[#allocation9 + $0x30] sm:$0xff]  ;;  %v160_v14 = vld [vmem:[#allocation9 + $0x28] sm:$0xff] }
  0x2a   :  { %302 = vmatpush3.msra.mxu0 %v70_v2  ;;  %309 = vmatpush3.msra.mxu1 %v169_v5  ;;  %v159_v15 = vld [vmem:[#allocation9 + $0x20] sm:$0xff]  ;;  %v158_v16 = vld [vmem:[#allocation9 + $0x18] sm:$0xff]  ;;  %v157_v17 = vld [vmem:[#allocation9 + $0x10] sm:$0xff] }
  0x2b   :  { %304 = vmatmul.mubr.msk.f32.vlgmr.msra.gmra.mxu0 %vm79_vm1, %v69_v3  ;;  %310 = vmatprep.subr.mxu1 %v440_v0  ;;  %v156_v18 = vld [vmem:[#allocation9 + $0x8] sm:$0xff]  ;;  %v155_v19 = vld [vmem:[#allocation9] sm:$0xff] }
  0x2c   :  { %311 = vmatpush3.msra.mxu1 %v168_v6  ;;  %v276_v20 = vld [vmem:[%s502_s3] ss:$0 sm:$0xff]  ;;  %s409_s3 = scalar_lea.vmem %s267_s18, 128 }
  0x2d   :  { %312 = vmatprep.subr.mxu1 %v440_v0  ;;  %v278_v25 = vld [vmem:[%s504_s5] ss:$0 sm:$0xff]  ;;  %p410_p1 = scmp.ne.s32.totalorder %s267_s18, %s409_s3  ;;  %p415_p3 = scmp.lt.s32.totalorder %s409_s3, %s409_s3 }
  0x2e   :  { %313 = vmatpush3.msra.mxu1 %v167_v7 }
  0x2f   :  { %314 = vmatprep.subr.mxu1 %v440_v0  ;;  %p416_p4 = por %p415_p3, %p414_p2 }
  0x30   :  { %315 = vmatpush3.msra.mxu1 %v166_v8 }
  0x31   :  { %316 = vmatprep.subr.mxu1 %v440_v0  ;;  %p417_p5 = pnand %p416_p4, %p410_p1 }
  0x32   :  { %317 = vmatpush3.msra.mxu1 %v165_v9 }
  0x33   :  { %318 = vmatprep.subr.mxu1 %v440_v0 }
  0x34   :  { %319 = vmatpush3.msra.mxu1 %v164_v10 }
  0x35   :  { %320 = vmatprep.subr.mxu1 %v440_v0 }
  0x36   :  { %321 = vmatpush3.msra.mxu1 %v163_v11 }
  0x37   :  { %322 = vmatprep.subr.mxu1 %v440_v0 }
  0x38   :  { %323 = vmatpush3.msra.mxu1 %v162_v12 }
  0x39   :  { %324 = vmatprep.subr.mxu1 %v440_v0 }
  0x3a   :  { %325 = vmatpush3.msra.mxu1 %v161_v13 }
  0x3b   :  { %326 = vmatprep.subr.mxu1 %v440_v0 }
  0x3c   :  { %327 = vmatpush3.msra.mxu1 %v160_v14 }
  0x3d   :  { %328 = vmatprep.subr.mxu1 %v440_v0 }
  0x3e   :  { %329 = vmatpush3.msra.mxu1 %v159_v15 }
  0x3f   :  { %330 = vmatprep.subr.mxu1 %v440_v0 }
  0x40   :  { %331 = vmatpush3.msra.mxu1 %v158_v16 }
  0x41   :  { %332 = vmatprep.subr.mxu1 %v440_v0 }
  0x42   :  { %333 = vmatpush3.msra.mxu1 %v157_v17 }
  0x43   :  { %334 = vmatprep.subr.mxu1 %v440_v0 }
  0x44   :  { %335 = vmatpush3.msra.mxu1 %v156_v18 }
  0x45   :  { %336 = vmatprep.subr.mxu1 %v440_v0 }
  0x46   :  { %337 = vmatpush3.msra.mxu1 %v155_v19 }
  0xeb   :  { %v149_v21 = vpop.f32.mrf.mxu0 }
  0xec   :  { %v150_v22 = vadd.f32 %v276_v20, %v149_v21 }
  0xed   :  { %v305_v23 = vpop.f32.mrf.mxu0 }
  0xee   :  { %v153_v24 = vmax.f32 %v150_v22, 0.0 }
  0xf0   :  { %339 = vmatmul.mubr.f32.vlgmr.msra.gmra.mxu1 %v153_v24 }
 0x1b0   :  { %v237_v26 = vpop.f32.mrf.mxu1 }
 0x1b1   :  { %v254_v27 = vadd.f32 %v278_v25, %v237_v26 }
 0x1b2   :  { %v340_v29 = vpop.f32.mrf.mxu1 }
 0x1b3   :  { %v255_v30 = vmax.f32 %v254_v27, 0.0 }
 0x1b5   :  { %v258_v31 = vmul.f32 %v257_v28, %v255_v30 }
 0x1b7   :  { %259 = vst [vmem:[#allocation10] sm:$0xff] %v258_v31 }
 0x1b8   :  { %420 = shalt.err (!%p417_p5)
}
 0x1b9   :  { %269 = dma.vmem_to_hbm [thread:$0]  %s267_s18, 128, %s505_s6, [#allocation6]  }
 0x1ba   :  { %433 = dma.done.wait [#allocation6], 128  }
 0x1bb   :  { %434 = vsyncadd [#allocation6], 4294967168 }
 0x1bc   :  { %273 = vsyncpa [#allocation5], 1 }
 0x1bd   :  { %274 = vsyncpa [#allocation8], 1 }
 0x1be   :  { %275 = vsyncpa [#allocation6], 1 }

</bundles_post_ra>
